<compile_context>
chip_gen: v7x
topology: tpu7x:2x2x1
jax: 0.10.0
libtpu: 0.0.40
codegen_flags: <defaults>
</compile_context>

<pallas_src>
import functools
import math

import jax
import jax.numpy as jnp
from jax.experimental import pallas as pl
from jax.experimental.pallas import tpu as pltpu

_SHIFT = math.log(2.0)
_DEFAULT_TILE_BYTES = 2 * 1024 * 1024   # per-buffer tile; safe vs v5e scoped-VMEM default
_FALLBACK_ELEMS = 65536                 # below this, pallas_call launch overhead dominates


def _shifted_softplus_kernel(x_ref, o_ref, *, compute_dtype):
    x = x_ref[...].astype(compute_dtype)
    # Numerically stable softplus: log(1 + exp(x)) = max(x, 0) + log1p(exp(-|x|))
    sp = jnp.maximum(x, 0.0) + jnp.log1p(jnp.exp(-jnp.abs(x)))
    o_ref[...] = (sp - _SHIFT).astype(o_ref.dtype)


def _pick_block_rows(rows, cols, itemsize, tile_bytes):
    """Choose the block row-count: big tiles, but >= 2 (preferably even) grid
    blocks for non-trivial inputs so "parallel" shards across v7x's 2 TCs."""
    sub = {4: 8, 2: 16, 1: 32}.get(itemsize, 8)     # sublane packing multiple
    if rows <= sub:
        return rows                                  # full-extent block (exempt from (8,128))
    budget = max(sub, (tile_bytes // (cols * itemsize)) // sub * sub)
    half = ((rows + 1) // 2 + sub - 1) // sub * sub  # ~rows/2, rounded up to sublane multiple
    br = max(sub, min(budget, half))
    # Prefer an even block count so the two v7x TensorCores stay balanced.
    nblk = pl.cdiv(rows, br)
    if nblk > 1 and nblk % 2 == 1:
        br = max(sub, ((rows + nblk) // (nblk + 1) + sub - 1) // sub * sub)
    return br


def shifted_softplus(x, *, tile_bytes=_DEFAULT_TILE_BYTES,
                     fallback_elems=_FALLBACK_ELEMS,
                     compute_in_low_precision=False,
                     donate_input=False):
    """softplus(x) - log(2), elementwise, any shape / floating dtype."""
    orig_shape = x.shape
    dtype = x.dtype
    itemsize = jnp.dtype(dtype).itemsize
    total = x.size

    # Fast paths (single fused XLA pass, no kernel launch):
    #  * tiny inputs: pallas_call fixed overhead dominates;
    #  * ragged totals (not a multiple of 128): a Pallas path would need an extra
    #    pad + trailing slice (two extra full HBM passes); the fused XLA
    #    elementwise op is already at the HBM roofline for those.
    if total == 0 or total < fallback_elems or total % 128 != 0:
        return (jax.nn.softplus(x) - _SHIFT).astype(dtype)

    # Lane-dense slab: widest column count (multiple of 128) that divides the
    # total, so the reshape is a pure bitcast -- no pad, no trailing slice.
    for cols in (1024, 512, 256, 128):
        if total % cols == 0:
            break
    rows = total // cols
    slab = x.reshape(rows, cols)

    br = _pick_block_rows(rows, cols, itemsize, tile_bytes)
    grid = (pl.cdiv(rows, br),)

    compute_dtype = (dtype if (compute_in_low_precision and dtype == jnp.bfloat16)
                     else jnp.float32)

    params = {"dimension_semantics": ("parallel",)}
    block_bytes = br * cols * itemsize
    if 4 * block_bytes > (16 << 20):   # beyond v5e's scoped-VMEM default: raise the limit
        params["vmem_limit_bytes"] = min(5 * block_bytes, 100 << 20)

    extra = {"input_output_aliases": {0: 0}} if donate_input else {}

    out = pl.pallas_call(
        functools.partial(_shifted_softplus_kernel, compute_dtype=compute_dtype),
        out_shape=jax.ShapeDtypeStruct((rows, cols), dtype),
        grid_spec=pltpu.PrefetchScalarGridSpec(
            num_scalar_prefetch=0,
            grid=grid,
            in_specs=[pl.BlockSpec((br, cols), lambda i: (i, 0))],
            out_specs=pl.BlockSpec((br, cols), lambda i: (i, 0)),
        ),
        compiler_params=pltpu.CompilerParams(**params),
        cost_estimate=pl.CostEstimate(
            flops=4 * total,
            transcendentals=2 * total,
            bytes_accessed=2 * total * itemsize,
        ),
        **extra,
    )(slab)

    return out.reshape(orig_shape)


if __name__ == "__main__":
    key = jax.random.PRNGKey(0)
    k1, k2, k3, k4 = jax.random.split(key, 4)

    def ref_fn(a):
        return jax.nn.softplus(a.astype(jnp.float32)) - _SHIFT

    # 1) SchNet-sized activation (8 nodes x 128 features): tiny -> fused fallback path.
    x_small = jax.random.normal(k1, (8, 128), dtype=jnp.float32) * 3.0
    out_small = jax.block_until_ready(shifted_softplus(x_small))
    assert jnp.allclose(out_small, ref_fn(x_small), atol=1e-6), "small/fallback mismatch"

    # 2) Kernel path, single full-extent block (forced past the small-input fallback).
    x_one = jax.random.normal(k2, (64, 128), dtype=jnp.float32) * 3.0
    out_one = jax.block_until_ready(shifted_softplus(x_one, fallback_elems=0))
    assert jnp.allclose(out_one, ref_fn(x_one), atol=1e-6), "single-block mismatch"

    # 3) Kernel path, 2-block grid with a partial (masked) last block.
    x_multi = jax.random.normal(k3, (272, 128), dtype=jnp.float32) * 3.0
    out_multi = jax.block_until_ready(shifted_softplus(x_multi, fallback_elems=0))
    assert jnp.allclose(out_multi, ref_fn(x_multi), atol=1e-6), "multi-block mismatch"

    # 4) bf16 I/O with f32 compute; full-extent 2-row block exercises the
    #    "block equals full array dim" exemption from (16, 128) packing.
    x_bf = (jax.random.normal(k4, (16, 128), dtype=jnp.float32) * 3.0).astype(jnp.bfloat16)
    out_bf = jax.block_until_ready(shifted_softplus(x_bf, fallback_elems=0))
    ref_bf = ref_fn(x_bf)
    assert jnp.allclose(out_bf.astype(jnp.float32), ref_bf, atol=2e-2, rtol=2e-2), \
        "bf16 mismatch"

    # 5) bf16 end-to-end compute (optional v6e/v7x EUP path).
    out_bf_lp = jax.block_until_ready(
        shifted_softplus(x_bf, fallback_elems=0, compute_in_low_precision=True))
    assert jnp.allclose(out_bf_lp.astype(jnp.float32), ref_bf, atol=5e-2, rtol=5e-2), \
        "bf16 low-precision mismatch"

    # 6) Ragged shape (not a multiple of 128) -> fused fallback, no pad/slice passes.
    x_rag = jax.random.normal(k1, (10, 67), dtype=jnp.float32) * 3.0
    out_rag = jax.block_until_ready(shifted_softplus(x_rag))
    assert jnp.allclose(out_rag, ref_fn(x_rag), atol=1e-6), "ragged/fallback mismatch"

    print("KERNEL_OK")
</pallas_src>

<mosaic_0001>
module attributes {stable_mosaic.version = 11 : i64} {
  func.func @_shifted_softplus_kernel(%arg0: i32, %arg1: memref<8x1024xf32, #tpu.memory_space<vmem>>, %arg2: memref<8x1024xf32, #tpu.memory_space<vmem>>) attributes {dimension_semantics = [#tpu.dimension_semantics<parallel>], iteration_bounds = array<i64: 1>, scalar_prefetch = 0 : i64, scratch_operands = 0 : i64, tpu.core_type = #tpu.core_type<tc>, window_params = [{transform_indices = @transform_0, window_bounds = array<i64: 8, 1024>}, {transform_indices = @transform_1, window_bounds = array<i64: 8, 1024>}]} {
    %c0 = arith.constant 0 : index
    %c0_0 = arith.constant 0 : index
    %0 = vector.load %arg1[%c0, %c0_0] : memref<8x1024xf32, #tpu.memory_space<vmem>>, vector<8x1024xf32>
    %cst = arith.constant 0.000000e+00 : f32
    %1 = vector.broadcast %cst : f32 to vector<8x1024xf32>
    %2 = arith.maximumf %0, %1 : vector<8x1024xf32>
    %3 = math.absf %0 : vector<8x1024xf32>
    %cst_1 = arith.constant 0.000000e+00 : f32
    %4 = vector.broadcast %cst_1 : f32 to vector<8x1024xf32>
    %5 = arith.subf %4, %3 : vector<8x1024xf32>
    %6 = math.exp %5 : vector<8x1024xf32>
    %7 = math.log1p %6 : vector<8x1024xf32>
    %8 = arith.addf %2, %7 : vector<8x1024xf32>
    %cst_2 = arith.constant 0.693147182 : f32
    %9 = vector.broadcast %cst_2 : f32 to vector<8x1024xf32>
    %10 = arith.subf %8, %9 : vector<8x1024xf32>
    %c0_3 = arith.constant 0 : index
    %c0_4 = arith.constant 0 : index
    %11 = vector.load %arg2[%c0_3, %c0_4] : memref<8x1024xf32, #tpu.memory_space<vmem>>, vector<8x1024xf32>
    tpu.vector_store %arg2[%c0_3, %c0_4], %10 {strides = array<i32>} : memref<8x1024xf32, #tpu.memory_space<vmem>>, vector<8x1024xf32>,
    return
  }
  func.func @transform_0(%arg0: i32) -> (i32, i32) {
    %c0_i32 = arith.constant 0 : i32
    %c0_i32_0 = arith.constant 0 : i32
    return %arg0, %c0_i32 : i32, i32
  }
  func.func @transform_1(%arg0: i32) -> (i32, i32) {
    %c0_i32 = arith.constant 0 : i32
    %c0_i32_0 = arith.constant 0 : i32
    return %arg0, %c0_i32 : i32, i32
  }
}

</mosaic_0001>

<bundles_post_ra>
// kernel: tpu_custom_call.1
= control target key start
LH: loop header
LB: loop body
LE: loop exit
PB: predicated region body
PF: predicated region fallthrough
CT: control target
= control target key end

     0   :  { %6 = vsyncpa [#allocation3], 0  ;;  %s398_s0 = inlined_call_operand.hbm [shape: f32[8,1024], index: 0, kind: input, shape index: {}]   ;;  %s399_s1 = inlined_call_operand.hbm [shape: f32[8,1024], index: 1, kind: output, shape index: {}]  }
   0x1   :  { %7 = vsyncpa [#allocation4], 0  ;;  %s270_s6 = smov [#allocation2]   ;;  %s222_s10 = scalar_lea.hbm %s398_s0, 1024 }
   0x2   :  { %s14_s7 = sshll.u32 %s270_s6, 4  ;;  %p223_p0 = scmp.ne.s32.totalorder %s398_s0, %s222_s10  ;;  %s15_s7 = int_to_ptr.vmem [resolvable:$true] %s14_s7 }
   0x3   :  { %p226_p1 = scmp.lt.u32.totalorder %s222_s10, %s398_s0 }
   0x5   :  { %p228_p2 = pnand %p226_p1, %p223_p0 }
   0x7   :  { %231 = shalt.err (!%p228_p2)
}
   0x8   :  { %s232_s15 = scalar_lea.vmem %s15_s7, 1024  ;;  %p237_p4 = scmp.lt.s32.totalorder %s15_s7, %s15_s7 }
   0x9   :  { %p233_p3 = scmp.ne.s32.totalorder %s15_s7, %s232_s15  ;;  %p238_p5 = scmp.lt.s32.totalorder %s232_s15, %s232_s15 }
   0xb   :  { %p239_p6 = por %p238_p5, %p237_p4 }
   0xd   :  { %p240_p7 = pnand %p239_p6, %p233_p3 }
   0xf   :  { %243 = shalt.err (!%p240_p7)
}
  0x10   :  { %17 = dma.hbm_to_vmem [thread:$0]  %s398_s0, 1024, %s15_s7, [#allocation3]  }
  0x11   :  { %266 = dma.done.wait [#allocation3], 1024  }
  0x12   :  { %267 = vsyncadd [#allocation3], 4294966272  ;;  %v294_v0 = vld [vmem:[#allocation2] sm:$0xff]  ;;  %v296_v1 = vld [vmem:[#allocation2 + $0x8] sm:$0xff]  ;;  %s271_s0 = smov [#allocation5]  }
  0x13   :  { %v298_v2 = vld [vmem:[#allocation2 + $0x10] sm:$0xff]  ;;  %v37_v3 = vand.u32 2147483647, %v294_v0  ;;  %v38_v4 = vand.u32 2147483647, %v296_v1  ;;  %v303_v6 = vld [vmem:[#allocation2 + $0x18] sm:$0xff] }
  0x14   :  { %v39_v5 = vand.u32 2147483647, %v298_v2  ;;  %v305_v7 = vld [vmem:[#allocation2 + $0x20] sm:$0xff]  ;;  %v40_v10 = vand.u32 2147483647, %v303_v6  ;;  %v308_v11 = vld [vmem:[#allocation2 + $0x28] sm:$0xff] }
  0x15   :  { %v45_v8 = vsub.f32 0.0, %v37_v3  ;;  %v46_v9 = vsub.f32 0.0, %v38_v4  ;;  %v41_v13 = vand.u32 2147483647, %v305_v7  ;;  %v311_v14 = vld [vmem:[#allocation2 + $0x30] sm:$0xff]  ;;  %v313_v15 = vld [vmem:[#allocation2 + $0x38] sm:$0xff] }
  0x16   :  { %v47_v12 = vsub.f32 0.0, %v39_v5  ;;  %v48_v18 = vsub.f32 0.0, %v40_v10  ;;  %v42_v21 = vand.u32 2147483647, %v308_v11  ;;  %v43_v23 = vand.u32 2147483647, %v311_v14 }
  0x17   :  { %v53_v16 = vmul.f32 1.442695, %v45_v8  ;;  %v55_v17 = vmul.f32 1.442695, %v46_v9  ;;  %v49_v20 = vsub.f32 0.0, %v41_v13  ;;  %v29_v42 = vmax.f32 %v294_v0, 0.0 }
  0x18   :  { %v57_v19 = vmul.f32 1.442695, %v47_v12  ;;  %v59_v22 = vmul.f32 1.442695, %v48_v18  ;;  %v44_v24 = vand.u32 2147483647, %v313_v15 }
  0x19   :  { %190 = vpow2.f32 %v53_v16  ;;  %v61_v25 = vmul.f32 1.442695, %v49_v20  ;;  %v50_v26 = vsub.f32 0.0, %v42_v21  ;;  %v51_v27 = vsub.f32 0.0, %v43_v23  ;;  %s171_s18 = sshll.u32 %s271_s0, 4  ;;  %s172_s18 = int_to_ptr.vmem [resolvable:$true] %s171_s18 }
  0x1a   :  { %192 = vpow2.f32 %v55_v17  ;;  %v52_v28 = vsub.f32 0.0, %v44_v24  ;;  %v30_v43 = vmax.f32 %v296_v1, 0.0  ;;  %v31_v47 = vmax.f32 %v298_v2, 0.0  ;;  %s244_s19 = scalar_lea.vmem %s172_s18, 1024  ;;  %p249_p9 = scmp.lt.s32.totalorder %s172_s18, %s172_s18 }
  0x1b   :  { %194 = vpow2.f32 %v57_v19  ;;  %v63_v29 = vmul.f32 1.442695, %v50_v26  ;;  %v65_v30 = vmul.f32 1.442695, %v51_v27  ;;  %v32_v49 = vmax.f32 %v303_v6, 0.0  ;;  %p245_p8 = scmp.ne.s32.totalorder %s172_s18, %s244_s19  ;;  %p250_p10 = scmp.lt.s32.totalorder %s244_s19, %s244_s19 }
  0x1c   :  { %196 = vpow2.f32 %v59_v22  ;;  %v67_v31 = vmul.f32 1.442695, %v52_v28  ;;  %v33_v56 = vmax.f32 %v305_v7, 0.0  ;;  %v34_v57 = vmax.f32 %v308_v11, 0.0 }
  0x1d   :  { %198 = vpow2.f32 %v61_v25  ;;  %v35_v62 = vmax.f32 %v311_v14, 0.0  ;;  %v36_v2 = vmax.f32 %v313_v15, 0.0  ;;  %p251_p11 = por %p250_p10, %p249_p9 }
  0x1e   :  { %200 = vpow2.f32 %v63_v29 }
  0x1f   :  { %202 = vpow2.f32 %v65_v30  ;;  %p252_p12 = pnand %p251_p11, %p245_p8 }
  0x20   :  { %204 = vpow2.f32 %v67_v31 }
  0x23   :  { %v191_v32 = vpop.eup %190 }
  0x24   :  { %v193_v33 = vpop.eup %192  ;;  %v69_v34 = vadd.f32 1.0, %v191_v32  ;;  %v72_v40 = vmul.f32 -0.5, %v191_v32  ;;  %v75_v46 = vand.u32 2147483647, %v191_v32 }
  0x25   :  { %v195_v35 = vpop.eup %194  ;;  %v78_v36 = vadd.f32 1.0, %v193_v33  ;;  %v81_v41 = vmul.f32 -0.5, %v193_v33  ;;  %v84_v51 = vand.u32 2147483647, %v193_v33 }
  0x26   :  { %v197_v37 = vpop.eup %196  ;;  %206 = vlog2.f32 %v69_v34  ;;  %v87_v38 = vadd.f32 1.0, %v195_v35  ;;  %v90_v48 = vmul.f32 -0.5, %v195_v35  ;;  %v73_v54 = vadd.f32 1.0, %v72_v40 }
  0x27   :  { %v199_v39 = vpop.eup %198  ;;  %208 = vlog2.f32 %v78_v36  ;;  %v96_v44 = vadd.f32 1.0, %v197_v37  ;;  %v99_v52 = vmul.f32 -0.5, %v197_v37  ;;  %v82_v55 = vadd.f32 1.0, %v81_v41 }
  0x28   :  { %210 = vlog2.f32 %v87_v38  ;;  %v320_v45 = vpop.eup %200  ;;  %v105_v53 = vadd.f32 1.0, %v199_v39  ;;  %v93_v59 = vand.u32 2147483647, %v195_v35  ;;  %v108_v60 = vmul.f32 -0.5, %v199_v39 }
  0x29   :  { %v324_v50 = vpop.eup %202  ;;  %212 = vlog2.f32 %v96_v44  ;;  %v114_v61 = vadd.f32 1.0, %v320_v45  ;;  %vm331_vm0 = vcmp.lt.f32.partialorder %v75_v46, 0.0004427343  ;;  %v91_v63 = vadd.f32 1.0, %v90_v48 }
  0x2a   :  { %v328_v58 = vpop.eup %204  ;;  %214 = vlog2.f32 %v105_v53  ;;  %v102_v0 = vand.u32 2147483647, %v197_v37  ;;  %v123_v1 = vadd.f32 1.0, %v324_v50  ;;  %vm336_vm1 = vcmp.lt.f32.partialorder %v84_v51, 0.0004427343 }
  0x2b   :  { %v100_v3 = vadd.f32 1.0, %v99_v52  ;;  %216 = vlog2.f32 %v114_v61  ;;  %v117_v4 = vmul.f32 -0.5, %v320_v45  ;;  %v74_v5 = vmul.f32 %v191_v32, %v73_v54 }
  0x2c   :  { %v111_v8 = vand.u32 2147483647, %v199_v39  ;;  %218 = vlog2.f32 %v123_v1  ;;  %v132_v9 = vadd.f32 1.0, %v328_v58  ;;  %v83_v12 = vmul.f32 %v193_v33, %v82_v55 }
  0x2d   :  { %vm342_vm2 = vcmp.lt.f32.partialorder %v93_v59, 0.0004427343  ;;  %v109_v16 = vadd.f32 1.0, %v108_v60  ;;  %v126_v17 = vmul.f32 -0.5, %v324_v50  ;;  %v92_v20 = vmul.f32 %v195_v35, %v91_v63 }
  0x2e   :  { %vm347_vm3 = vcmp.lt.f32.partialorder %v102_v0, 0.0004427343  ;;  %220 = vlog2.f32 %v132_v9  ;;  %v101_v24 = vmul.f32 %v197_v37, %v100_v3  ;;  %v118_v25 = vadd.f32 1.0, %v117_v4 }
  0x2f   :  { %v135_v26 = vmul.f32 -0.5, %v328_v58  ;;  %vm354_vm4 = vcmp.lt.f32.partialorder %v111_v8, 0.0004427343  ;;  %v120_v30 = vand.u32 2147483647, %v320_v45  ;;  %v110_v34 = vmul.f32 %v199_v39, %v109_v16 }
  0x30   :  { %v207_v10 = vpop.eup %206  ;;  %v127_v35 = vadd.f32 1.0, %v126_v17  ;;  %v129_v40 = vand.u32 2147483647, %v324_v50  ;;  %v119_v48 = vmul.f32 %v320_v45, %v118_v25  ;;  %v138_v39 = vand.u32 2147483647, %v328_v58 }
  0x31   :  { %v209_v18 = vpop.eup %208  ;;  %v71_v19 = vmul.f32 0.6931472, %v207_v10  ;;  %v136_v51 = vadd.f32 1.0, %v135_v26  ;;  %vm370_vm5 = vcmp.lt.f32.partialorder %v120_v30, 0.0004427343 }
  0x32   :  { %v211_v22 = vpop.eup %210  ;;  %v80_v23 = vmul.f32 0.6931472, %v209_v18  ;;  %v128_v45 = vmul.f32 %v324_v50, %v127_v35  ;;  %vm130_vm6 = vcmp.lt.f32.partialorder %v129_v40, 0.0004427343  ;;  %vm139_vm7 = vcmp.lt.f32.partialorder %v138_v39, 0.0004427343 }
  0x33   :  { %v77_v27 = vsel %vm331_vm0, %v74_v5, %v71_v19  ;;  %v89_v28 = vmul.f32 0.6931472, %v211_v22  ;;  %v213_v31 = vpop.eup %212  ;;  %v137_v0 = vmul.f32 %v328_v58, %v136_v51 }
  0x34   :  { %v141_v32 = vadd.f32 %v77_v27, %v29_v42  ;;  %v86_v33 = vsel %vm336_vm1, %v83_v12, %v80_v23  ;;  %v98_v38 = vmul.f32 0.6931472, %v213_v31  ;;  %v215_v41 = vpop.eup %214 }
  0x35   :  { %v142_v36 = vadd.f32 %v86_v33, %v30_v43  ;;  %v95_v37 = vsel %vm342_vm2, %v92_v20, %v89_v28  ;;  %v107_v53 = vmul.f32 0.6931472, %v215_v41  ;;  %v217_v43 = vpop.eup %216 }
  0x36   :  { %v180_v44 = vadd.f32 -0.6931472, %v141_v32  ;;  %v143_v46 = vadd.f32 %v95_v37, %v31_v47  ;;  %v104_v42 = vsel %vm347_vm3, %v101_v24, %v98_v38  ;;  %v219_v47 = vpop.eup %218  ;;  %v116_v61 = vmul.f32 0.6931472, %v217_v43 }
  0x37   :  { %v181_v52 = vadd.f32 -0.6931472, %v142_v36  ;;  %v144_v55 = vadd.f32 %v104_v42, %v32_v49  ;;  %v113_v60 = vsel %vm354_vm4, %v110_v34, %v107_v53  ;;  %v125_v49 = vmul.f32 0.6931472, %v219_v47 }
  0x38   :  { %157 = vst [vmem:[#allocation5] sm:$0xff] %v180_v44  ;;  %v182_v54 = vadd.f32 -0.6931472, %v143_v46  ;;  %v145_v6 = vadd.f32 %v113_v60, %v33_v56  ;;  %v221_v1 = vpop.eup %220  ;;  %v122_v50 = vsel %vm370_vm5, %v119_v48, %v116_v61 }
  0x39   :  { %158 = vst [vmem:[#allocation5 + $0x8] sm:$0xff] %v181_v52  ;;  %v183_v63 = vadd.f32 -0.6931472, %v144_v55  ;;  %v146_v14 = vadd.f32 %v122_v50, %v34_v57  ;;  %v131_v4 = vsel %vm130_vm6, %v128_v45, %v125_v49  ;;  %v134_v5 = vmul.f32 0.6931472, %v221_v1 }
  0x3a   :  { %159 = vst [vmem:[#allocation5 + $0x10] sm:$0xff] %v182_v54  ;;  %v184_v3 = vadd.f32 -0.6931472, %v145_v6  ;;  %v147_v8 = vadd.f32 %v131_v4, %v35_v62 }
  0x3b   :  { %160 = vst [vmem:[#allocation5 + $0x18] sm:$0xff] %v183_v63  ;;  %v185_v7 = vadd.f32 -0.6931472, %v146_v14  ;;  %v140_v56 = vsel %vm139_vm7, %v137_v0, %v134_v5 }
  0x3c   :  { %161 = vst [vmem:[#allocation5 + $0x20] sm:$0xff] %v184_v3  ;;  %v186_v58 = vadd.f32 -0.6931472, %v147_v8  ;;  %v148_v9 = vadd.f32 %v140_v56, %v36_v2 }
  0x3d   :  { %162 = vst [vmem:[#allocation5 + $0x28] sm:$0xff] %v185_v7 }
  0x3e   :  { %163 = vst [vmem:[#allocation5 + $0x30] sm:$0xff] %v186_v58  ;;  %v187_v10 = vadd.f32 -0.6931472, %v148_v9 }
  0x40   :  { %164 = vst [vmem:[#allocation5 + $0x38] sm:$0xff] %v187_v10 }
  0x41   :  { %255 = shalt.err (!%p252_p12)
}
  0x42   :  { %s256_s22 = scalar_lea.hbm %s399_s1, 1024 }
  0x43   :  { %p257_p13 = scmp.ne.s32.totalorder %s399_s1, %s256_s22  ;;  %p260_p0 = scmp.lt.u32.totalorder %s256_s22, %s399_s1 }
  0x45   :  { %p262_p1 = pnand %p260_p0, %p257_p13 }
  0x47   :  { %265 = shalt.err (!%p262_p1)
}
  0x48   :  { %174 = dma.vmem_to_hbm [thread:$0]  %s172_s18, 1024, %s399_s1, [#allocation4]  }
  0x49   :  { %268 = dma.done.wait [#allocation4], 1024  }
  0x4a   :  { %269 = vsyncadd [#allocation4], 4294966272 }
  0x4b   :  { %178 = vsyncpa [#allocation3], 1 }
  0x4c   :  { %179 = vsyncpa [#allocation4], 1 }

</bundles_post_ra>
